<compile_context>
chip_gen: v7x
topology: tpu7x:2x2x1
jax: 0.10.0
libtpu: 0.0.40
codegen_flags: <defaults>
</compile_context>

<pallas_src>
import math
import functools

import jax
import jax.numpy as jnp
from jax import lax
from jax.experimental import pallas as pl
from jax.experimental.pallas import tpu as pltpu


def _pair(v):
    return tuple(v) if isinstance(v, (tuple, list)) else (v, v)


def _round_up(a, b):
    return (a + b - 1) // b * b


# ------------------------------ Pallas kernel --------------------------------

def _fused_conv_kernel(x_ref, w_ref, b_ref, o_ref, *, tap_offsets, tm, num_tiles):
    """One (image, group) per grid step.

    x_ref: (Cin_g, Lin)        bf16  flattened, spatially padded input (+ zero tail)
    w_ref: (T, Cout_g, Cin_g)  bf16  per-tap weight matrices, T = KH*KW
    b_ref: (Cout_g, 1)         f32
    o_ref: (Cout_g, M_pad)     f32   transposed "wide" output (lane axis = spatial)
    """
    cout = o_ref.shape[0]
    bias = jnp.broadcast_to(b_ref[...], (cout, tm))          # hoisted out of loops
    # Static loop: all slice offsets are compile-time constants (128-aligned base
    # + small per-tap shift), so every load/store is a plain (un-gathered) access
    # and every store is a lane-dense full-width vst.
    for mt in range(num_tiles):
        base = mt * tm
        acc = jnp.zeros((cout, tm), jnp.float32)
        for t, off in enumerate(tap_offsets):                # fused im2col
            x_sl = x_ref[:, base + off: base + off + tm]     # (Cin_g, tm) bf16
            acc = acc + jnp.dot(w_ref[t], x_sl,
                                preferred_element_type=jnp.float32)
        o_ref[:, base: base + tm] = acc + bias


# ------------------------------- conv wrapper ---------------------------------

@functools.partial(jax.jit, static_argnames=("stride", "padding", "dilation",
                                              "groups", "tm_target"))
def _conv2d_pallas(x, weight, bias, *, stride, padding, dilation, groups,
                   tm_target=512):
    N, Cin, H, W = x.shape
    Cout, Cin_g, KH, KW = weight.shape
    SH, SW = stride
    PH, PW = padding
    DH, DW = dilation
    assert Cin == Cin_g * groups and Cout % groups == 0
    Cout_g = Cout // groups

    Hp, Wp = H + 2 * PH, W + 2 * PW
    OH = (Hp - DH * (KH - 1) - 1) // SH + 1
    OW = (Wp - DW * (KW - 1) - 1) // SW + 1
    OH1 = Hp - DH * (KH - 1)                 # stride-1 ("wide") output height
    T = KH * KW

    # Wide-output extent on the lane axis, rounded up for lane-dense stores.
    m_valid = OH1 * Wp
    tm = min(_round_up(tm_target, 128), _round_up(m_valid, 128))
    M_pad = _round_up(m_valid, tm)
    num_tiles = M_pad // tm
    max_off = (KH - 1) * DH * Wp + (KW - 1) * DW
    tap_offsets = tuple(kh * DH * Wp + kw * DW
                        for kh in range(KH) for kw in range(KW))
    Lin = _round_up(M_pad + max_off, 128)    # flat input length incl. zero tail

    # --- layout (cheap, input-sized): spatial pad, flatten, cast to bf16 ------
    xp = jnp.pad(x, ((0, 0), (0, 0), (PH, PH), (PW, PW)))
    xf = xp.reshape(N, groups, Cin_g, Hp * Wp)
    xf = jnp.pad(xf, ((0, 0), (0, 0), (0, 0), (0, Lin - Hp * Wp)))
    xf = xf.astype(jnp.bfloat16)

    w_t = (weight.reshape(groups, Cout_g, Cin_g, KH, KW)
                 .transpose(0, 3, 4, 1, 2)               # (g, KH, KW, Cout_g, Cin_g)
                 .reshape(groups, T, Cout_g, Cin_g)
                 .astype(jnp.bfloat16))
    b_g = bias.reshape(groups, Cout_g, 1).astype(jnp.float32)

    flops = 2 * N * groups * M_pad * Cout_g * Cin_g * T
    bytes_accessed = (xf.size * 2 + w_t.size * 2 + b_g.size * 4
                      + N * groups * Cout_g * M_pad * 4)
    # Double-buffered in/out blocks + resident weights/bias, with headroom;
    # capped so it stays safe on v7x's smaller (64 MiB physical) VMEM.
    step_bytes = (2 * (Cin_g * Lin * 2 + Cout_g * M_pad * 4)
                  + w_t.size * 2 + b_g.size * 4)
    vmem_limit = int(min(48 * 2 ** 20, max(16 * 2 ** 20, 4 * step_bytes)))

    kernel = functools.partial(_fused_conv_kernel, tap_offsets=tap_offsets,
                               tm=tm, num_tiles=num_tiles)

    out_wide = pl.pallas_call(
        kernel,
        out_shape=jax.ShapeDtypeStruct((N, groups, Cout_g, M_pad), jnp.float32),
        grid_spec=pltpu.PrefetchScalarGridSpec(
            num_scalar_prefetch=0,
            grid=(N, groups),
            in_specs=[
                pl.BlockSpec((None, None, Cin_g, Lin), lambda n, g: (n, g, 0, 0)),
                pl.BlockSpec((None, T, Cout_g, Cin_g), lambda n, g: (g, 0, 0, 0)),
                pl.BlockSpec((None, Cout_g, 1), lambda n, g: (g, 0, 0)),
            ],
            out_specs=pl.BlockSpec((None, None, Cout_g, M_pad),
                                   lambda n, g: (n, g, 0, 0)),
        ),
        compiler_params=pltpu.CompilerParams(
            dimension_semantics=("parallel", "parallel"),
            vmem_limit_bytes=vmem_limit,
        ),
        cost_estimate=pl.CostEstimate(flops=flops, transcendentals=0,
                                      bytes_accessed=bytes_accessed),
    )(xf, w_t, b_g)

    # Un-layout: keep the valid wide rows, subsample for stride, drop the
    # Wp-OW garbage columns, merge groups back into the channel axis.
    wide = out_wide[..., : OH1 * Wp].reshape(N, groups, Cout_g, OH1, Wp)
    out = wide[:, :, :, ::SH, ::SW][:, :, :, :OH, :OW]
    return out.reshape(N, Cout, OH, OW)


# ----------------------- BayesianConv2D params / forward ----------------------

def init_bayesian_conv2d_params(key, in_channels, out_channels, kernel_size,
                                groups=1, ratio=0.25):
    """Deterministic re-implementation of _BayesianConvNd.__init__ init."""
    KH, KW = _pair(kernel_size)
    w_shape = (out_channels, in_channels // groups, KH, KW)
    fan_out = out_channels * KH * KW              # out_channels * receptive_field
    total_var = 2.0 / fan_out
    noise_var = total_var * ratio
    mu_var = total_var - noise_var
    noise_std, mu_std = math.sqrt(noise_var), math.sqrt(mu_var)
    bound = math.sqrt(3.0) * mu_std
    rho_init = math.log(math.exp(noise_std) - 1.0)

    weight_mu = jax.random.uniform(key, w_shape, jnp.float32,
                                   minval=-bound, maxval=bound)
    bias = jnp.zeros((out_channels,), jnp.float32)              # uniform(0, 0)
    weight_rho = jnp.full((out_channels, 1, 1, 1), rho_init, jnp.float32)
    return {"weight_mu": weight_mu, "weight_rho": weight_rho, "bias": bias}


def bayesian_conv2d_forward(x, params, *, stride=1, padding=0, dilation=1,
                            groups=1, sample=False, key=None, tm_target=512):
    """Forward pass matching BayesianConv2D.forward (NCHW in / NCHW out)."""
    weight_mu = params["weight_mu"]
    if sample:
        if key is None:
            raise ValueError("sample=True requires an explicit PRNG key")
        sigma = jnp.log1p(jnp.exp(params["weight_rho"]))        # (Cout,1,1,1)
        eps = jax.random.normal(key, weight_mu.shape, weight_mu.dtype)
        weight = weight_mu + sigma * eps
    else:
        weight = weight_mu
    return _conv2d_pallas(x, weight, params["bias"],
                          stride=_pair(stride), padding=_pair(padding),
                          dilation=_pair(dilation), groups=groups,
                          tm_target=tm_target)


# ------------------------------------ main ------------------------------------

if __name__ == "__main__":
    key = jax.random.PRNGKey(0)
    k_x, k_w, k_s = jax.random.split(key, 3)

    # Module config: BayesianConv2D(4, 8, kernel_size=3, stride=1, padding=1)
    in_channels, out_channels = 4, 8
    kernel_size = (3, 3)
    stride, padding, dilation, groups = (1, 1), (1, 1), (1, 1), 1

    x = jax.random.normal(k_x, (2, 4, 16, 16), jnp.float32)
    params = init_bayesian_conv2d_params(k_w, in_channels, out_channels,
                                         kernel_size, groups=groups, ratio=0.25)

    out = bayesian_conv2d_forward(x, params, stride=stride, padding=padding,
                                  dilation=dilation, groups=groups, sample=False)
    out = jax.block_until_ready(out)

    # Reference: XLA conv (same semantics as F.conv2d with sample=False).
    def ref_conv(xr, wr):
        return lax.conv_general_dilated(
            xr, wr, window_strides=stride,
            padding=[(padding[0], padding[0]), (padding[1], padding[1])],
            rhs_dilation=dilation,
            dimension_numbers=("NCHW", "OIHW", "NCHW"),
            feature_group_count=groups,
        ) + params["bias"].reshape(1, -1, 1, 1)

    ref_f32 = ref_conv(x, params["weight_mu"])
    # bf16-matched reference (kernel feeds the MXU bf16 operands, f32 accum).
    ref_bf16 = ref_conv(x.astype(jnp.bfloat16).astype(jnp.float32),
                        params["weight_mu"].astype(jnp.bfloat16).astype(jnp.float32))

    assert out.shape == ref_f32.shape == (2, 8, 16, 16)
    assert jnp.allclose(out, ref_bf16, atol=1e-2, rtol=1e-2), \
        float(jnp.max(jnp.abs(out - ref_bf16)))
    assert jnp.allclose(out, ref_f32, atol=5e-2, rtol=5e-2), \
        float(jnp.max(jnp.abs(out - ref_f32)))

    # Sampled-weight path (sample=True): exercise it; shapes only (RNG differs
    # from torch so values are not comparable).
    out_s = bayesian_conv2d_forward(x, params, stride=stride, padding=padding,
                                    dilation=dilation, groups=groups,
                                    sample=True, key=k_s)
    out_s = jax.block_until_ready(out_s)
    assert out_s.shape == out.shape

    print("KERNEL_OK")
</pallas_src>

<mosaic_0001>
module attributes {stable_mosaic.version = 11 : i64} {
  func.func @_fused_conv_kernel(%arg0: i32, %arg1: i32, %arg2: memref<1x1x4x512xbf16, #tpu.memory_space<vmem>>, %arg3: memref<1x9x8x4xbf16, #tpu.memory_space<vmem>>, %arg4: memref<1x8x1xf32, #tpu.memory_space<vmem>>, %arg5: memref<1x1x8x384xf32, #tpu.memory_space<vmem>>) attributes {dimension_semantics = [#tpu.dimension_semantics<parallel>, #tpu.dimension_semantics<parallel>], iteration_bounds = array<i64: 2, 1>, scalar_prefetch = 0 : i64, scratch_operands = 0 : i64, tpu.core_type = #tpu.core_type<tc>, window_params = [{transform_indices = @transform_0, window_bounds = array<i64: 1, 1, 4, 512>}, {transform_indices = @transform_1, window_bounds = array<i64: 1, 9, 8, 4>}, {transform_indices = @transform_2, window_bounds = array<i64: 1, 8, 1>}, {transform_indices = @transform_3, window_bounds = array<i64: 1, 1, 8, 384>}]} {
    %c0 = arith.constant 0 : index
    %c0_0 = arith.constant 0 : index
    %c0_1 = arith.constant 0 : index
    %0 = vector.load %arg4[%c0, %c0_0, %c0_1] : memref<1x8x1xf32, #tpu.memory_space<vmem>>, vector<1x8x1xf32>
    %1 = vector.shape_cast %0 : vector<1x8x1xf32> to vector<8x1xf32>
    %2 = vector.shape_cast %1 : vector<8x1xf32> to vector<8x1xf32>
    %3 = vector.broadcast %2 : vector<8x1xf32> to vector<8x384xf32>
    %cst = arith.constant 0.000000e+00 : f32
    %4 = vector.broadcast %cst : f32 to vector<8x384xf32>
    %c0_2 = arith.constant 0 : index
    %c0_3 = arith.constant 0 : index
    %c0_4 = arith.constant 0 : index
    %c0_5 = arith.constant 0 : index
    %5 = vector.load %arg2[%c0_2, %c0_3, %c0_4, %c0_5] : memref<1x1x4x512xbf16, #tpu.memory_space<vmem>>, vector<1x1x4x384xbf16>
    %6 = vector.shape_cast %5 : vector<1x1x4x384xbf16> to vector<4x384xbf16>
    %c0_6 = arith.constant 0 : index
    %c0_7 = arith.constant 0 : index
    %c0_8 = arith.constant 0 : index
    %c0_9 = arith.constant 0 : index
    %7 = vector.load %arg3[%c0_6, %c0_7, %c0_8, %c0_9] : memref<1x9x8x4xbf16, #tpu.memory_space<vmem>>, vector<1x1x8x4xbf16>
    %8 = vector.shape_cast %7 : vector<1x1x8x4xbf16> to vector<8x4xbf16>
    %cst_10 = arith.constant dense<0.000000e+00> : vector<8x384xf32>
    %9 = tpu.matmul %8, %6, %cst_10 {dimension_numbers = #tpu.dot_dimension_numbers<[1], [0], [0], [1], [0, 0, 1, 1], [], []>} : vector<8x4xbf16>, vector<4x384xbf16>, vector<8x384xf32> -> vector<8x384xf32>
    %10 = arith.addf %4, %9 : vector<8x384xf32>
    %c0_11 = arith.constant 0 : index
    %c0_12 = arith.constant 0 : index
    %c0_13 = arith.constant 0 : index
    %c1 = arith.constant 1 : index
    %11 = vector.load %arg2[%c0_11, %c0_12, %c0_13, %c1] : memref<1x1x4x512xbf16, #tpu.memory_space<vmem>>, vector<1x1x4x384xbf16>
    %12 = vector.shape_cast %11 : vector<1x1x4x384xbf16> to vector<4x384xbf16>
    %c0_14 = arith.constant 0 : index
    %c1_15 = arith.constant 1 : index
    %c0_16 = arith.constant 0 : index
    %c0_17 = arith.constant 0 : index
    %13 = vector.load %arg3[%c0_14, %c1_15, %c0_16, %c0_17] : memref<1x9x8x4xbf16, #tpu.memory_space<vmem>>, vector<1x1x8x4xbf16>
    %14 = vector.shape_cast %13 : vector<1x1x8x4xbf16> to vector<8x4xbf16>
    %cst_18 = arith.constant dense<0.000000e+00> : vector<8x384xf32>
    %15 = tpu.matmul %14, %12, %cst_18 {dimension_numbers = #tpu.dot_dimension_numbers<[1], [0], [0], [1], [0, 0, 1, 1], [], []>} : vector<8x4xbf16>, vector<4x384xbf16>, vector<8x384xf32> -> vector<8x384xf32>
    %16 = arith.addf %10, %15 : vector<8x384xf32>
    %c0_19 = arith.constant 0 : index
    %c0_20 = arith.constant 0 : index
    %c0_21 = arith.constant 0 : index
    %c2 = arith.constant 2 : index
    %17 = vector.load %arg2[%c0_19, %c0_20, %c0_21, %c2] : memref<1x1x4x512xbf16, #tpu.memory_space<vmem>>, vector<1x1x4x384xbf16>
    %18 = vector.shape_cast %17 : vector<1x1x4x384xbf16> to vector<4x384xbf16>
    %c0_22 = arith.constant 0 : index
    %c2_23 = arith.constant 2 : index
    %c0_24 = arith.constant 0 : index
    %c0_25 = arith.constant 0 : index
    %19 = vector.load %arg3[%c0_22, %c2_23, %c0_24, %c0_25] : memref<1x9x8x4xbf16, #tpu.memory_space<vmem>>, vector<1x1x8x4xbf16>
    %20 = vector.shape_cast %19 : vector<1x1x8x4xbf16> to vector<8x4xbf16>
    %cst_26 = arith.constant dense<0.000000e+00> : vector<8x384xf32>
    %21 = tpu.matmul %20, %18, %cst_26 {dimension_numbers = #tpu.dot_dimension_numbers<[1], [0], [0], [1], [0, 0, 1, 1], [], []>} : vector<8x4xbf16>, vector<4x384xbf16>, vector<8x384xf32> -> vector<8x384xf32>
    %22 = arith.addf %16, %21 : vector<8x384xf32>
    %c0_27 = arith.constant 0 : index
    %c0_28 = arith.constant 0 : index
    %c0_29 = arith.constant 0 : index
    %c18 = arith.constant 18 : index
    %23 = vector.load %arg2[%c0_27, %c0_28, %c0_29, %c18] : memref<1x1x4x512xbf16, #tpu.memory_space<vmem>>, vector<1x1x4x384xbf16>
    %24 = vector.shape_cast %23 : vector<1x1x4x384xbf16> to vector<4x384xbf16>
    %c0_30 = arith.constant 0 : index
    %c3 = arith.constant 3 : index
    %c0_31 = arith.constant 0 : index
    %c0_32 = arith.constant 0 : index
    %25 = vector.load %arg3[%c0_30, %c3, %c0_31, %c0_32] : memref<1x9x8x4xbf16, #tpu.memory_space<vmem>>, vector<1x1x8x4xbf16>
    %26 = vector.shape_cast %25 : vector<1x1x8x4xbf16> to vector<8x4xbf16>
    %cst_33 = arith.constant dense<0.000000e+00> : vector<8x384xf32>
    %27 = tpu.matmul %26, %24, %cst_33 {dimension_numbers = #tpu.dot_dimension_numbers<[1], [0], [0], [1], [0, 0, 1, 1], [], []>} : vector<8x4xbf16>, vector<4x384xbf16>, vector<8x384xf32> -> vector<8x384xf32>
    %28 = arith.addf %22, %27 : vector<8x384xf32>
    %c0_34 = arith.constant 0 : index
    %c0_35 = arith.constant 0 : index
    %c0_36 = arith.constant 0 : index
    %c19 = arith.constant 19 : index
    %29 = vector.load %arg2[%c0_34, %c0_35, %c0_36, %c19] : memref<1x1x4x512xbf16, #tpu.memory_space<vmem>>, vector<1x1x4x384xbf16>
    %30 = vector.shape_cast %29 : vector<1x1x4x384xbf16> to vector<4x384xbf16>
    %c0_37 = arith.constant 0 : index
    %c4 = arith.constant 4 : index
    %c0_38 = arith.constant 0 : index
    %c0_39 = arith.constant 0 : index
    %31 = vector.load %arg3[%c0_37, %c4, %c0_38, %c0_39] : memref<1x9x8x4xbf16, #tpu.memory_space<vmem>>, vector<1x1x8x4xbf16>
    %32 = vector.shape_cast %31 : vector<1x1x8x4xbf16> to vector<8x4xbf16>
    %cst_40 = arith.constant dense<0.000000e+00> : vector<8x384xf32>
    %33 = tpu.matmul %32, %30, %cst_40 {dimension_numbers = #tpu.dot_dimension_numbers<[1], [0], [0], [1], [0, 0, 1, 1], [], []>} : vector<8x4xbf16>, vector<4x384xbf16>, vector<8x384xf32> -> vector<8x384xf32>
    %34 = arith.addf %28, %33 : vector<8x384xf32>
    %c0_41 = arith.constant 0 : index
    %c0_42 = arith.constant 0 : index
    %c0_43 = arith.constant 0 : index
    %c20 = arith.constant 20 : index
    %35 = vector.load %arg2[%c0_41, %c0_42, %c0_43, %c20] : memref<1x1x4x512xbf16, #tpu.memory_space<vmem>>, vector<1x1x4x384xbf16>
    %36 = vector.shape_cast %35 : vector<1x1x4x384xbf16> to vector<4x384xbf16>
    %c0_44 = arith.constant 0 : index
    %c5 = arith.constant 5 : index
    %c0_45 = arith.constant 0 : index
    %c0_46 = arith.constant 0 : index
    %37 = vector.load %arg3[%c0_44, %c5, %c0_45, %c0_46] : memref<1x9x8x4xbf16, #tpu.memory_space<vmem>>, vector<1x1x8x4xbf16>
    %38 = vector.shape_cast %37 : vector<1x1x8x4xbf16> to vector<8x4xbf16>
    %cst_47 = arith.constant dense<0.000000e+00> : vector<8x384xf32>
    %39 = tpu.matmul %38, %36, %cst_47 {dimension_numbers = #tpu.dot_dimension_numbers<[1], [0], [0], [1], [0, 0, 1, 1], [], []>} : vector<8x4xbf16>, vector<4x384xbf16>, vector<8x384xf32> -> vector<8x384xf32>
    %40 = arith.addf %34, %39 : vector<8x384xf32>
    %c0_48 = arith.constant 0 : index
    %c0_49 = arith.constant 0 : index
    %c0_50 = arith.constant 0 : index
    %c36 = arith.constant 36 : index
    %41 = vector.load %arg2[%c0_48, %c0_49, %c0_50, %c36] : memref<1x1x4x512xbf16, #tpu.memory_space<vmem>>, vector<1x1x4x384xbf16>
    %42 = vector.shape_cast %41 : vector<1x1x4x384xbf16> to vector<4x384xbf16>
    %c0_51 = arith.constant 0 : index
    %c6 = arith.constant 6 : index
    %c0_52 = arith.constant 0 : index
    %c0_53 = arith.constant 0 : index
    %43 = vector.load %arg3[%c0_51, %c6, %c0_52, %c0_53] : memref<1x9x8x4xbf16, #tpu.memory_space<vmem>>, vector<1x1x8x4xbf16>
    %44 = vector.shape_cast %43 : vector<1x1x8x4xbf16> to vector<8x4xbf16>
    %cst_54 = arith.constant dense<0.000000e+00> : vector<8x384xf32>
    %45 = tpu.matmul %44, %42, %cst_54 {dimension_numbers = #tpu.dot_dimension_numbers<[1], [0], [0], [1], [0, 0, 1, 1], [], []>} : vector<8x4xbf16>, vector<4x384xbf16>, vector<8x384xf32> -> vector<8x384xf32>
    %46 = arith.addf %40, %45 : vector<8x384xf32>
    %c0_55 = arith.constant 0 : index
    %c0_56 = arith.constant 0 : index
    %c0_57 = arith.constant 0 : index
    %c37 = arith.constant 37 : index
    %47 = vector.load %arg2[%c0_55, %c0_56, %c0_57, %c37] : memref<1x1x4x512xbf16, #tpu.memory_space<vmem>>, vector<1x1x4x384xbf16>
    %48 = vector.shape_cast %47 : vector<1x1x4x384xbf16> to vector<4x384xbf16>
    %c0_58 = arith.constant 0 : index
    %c7 = arith.constant 7 : index
    %c0_59 = arith.constant 0 : index
    %c0_60 = arith.constant 0 : index
    %49 = vector.load %arg3[%c0_58, %c7, %c0_59, %c0_60] : memref<1x9x8x4xbf16, #tpu.memory_space<vmem>>, vector<1x1x8x4xbf16>
    %50 = vector.shape_cast %49 : vector<1x1x8x4xbf16> to vector<8x4xbf16>
    %cst_61 = arith.constant dense<0.000000e+00> : vector<8x384xf32>
    %51 = tpu.matmul %50, %48, %cst_61 {dimension_numbers = #tpu.dot_dimension_numbers<[1], [0], [0], [1], [0, 0, 1, 1], [], []>} : vector<8x4xbf16>, vector<4x384xbf16>, vector<8x384xf32> -> vector<8x384xf32>
    %52 = arith.addf %46, %51 : vector<8x384xf32>
    %c0_62 = arith.constant 0 : index
    %c0_63 = arith.constant 0 : index
    %c0_64 = arith.constant 0 : index
    %c38 = arith.constant 38 : index
    %53 = vector.load %arg2[%c0_62, %c0_63, %c0_64, %c38] : memref<1x1x4x512xbf16, #tpu.memory_space<vmem>>, vector<1x1x4x384xbf16>
    %54 = vector.shape_cast %53 : vector<1x1x4x384xbf16> to vector<4x384xbf16>
    %c0_65 = arith.constant 0 : index
    %c8 = arith.constant 8 : index
    %c0_66 = arith.constant 0 : index
    %c0_67 = arith.constant 0 : index
    %55 = vector.load %arg3[%c0_65, %c8, %c0_66, %c0_67] : memref<1x9x8x4xbf16, #tpu.memory_space<vmem>>, vector<1x1x8x4xbf16>
    %56 = vector.shape_cast %55 : vector<1x1x8x4xbf16> to vector<8x4xbf16>
    %cst_68 = arith.constant dense<0.000000e+00> : vector<8x384xf32>
    %57 = tpu.matmul %56, %54, %cst_68 {dimension_numbers = #tpu.dot_dimension_numbers<[1], [0], [0], [1], [0, 0, 1, 1], [], []>} : vector<8x4xbf16>, vector<4x384xbf16>, vector<8x384xf32> -> vector<8x384xf32>
    %58 = arith.addf %52, %57 : vector<8x384xf32>
    %59 = arith.addf %58, %3 : vector<8x384xf32>
    %c0_69 = arith.constant 0 : index
    %c0_70 = arith.constant 0 : index
    %c0_71 = arith.constant 0 : index
    %c0_72 = arith.constant 0 : index
    %60 = vector.load %arg5[%c0_69, %c0_70, %c0_71, %c0_72] : memref<1x1x8x384xf32, #tpu.memory_space<vmem>>, vector<1x1x8x384xf32>
    %61 = vector.shape_cast %60 : vector<1x1x8x384xf32> to vector<8x384xf32>
    %62 = vector.shape_cast %59 : vector<8x384xf32> to vector<1x1x8x384xf32>
    tpu.vector_store %arg5[%c0_69, %c0_70, %c0_71, %c0_72], %62 {strides = array<i32>} : memref<1x1x8x384xf32, #tpu.memory_space<vmem>>, vector<1x1x8x384xf32>,
    return
  }
  func.func @transform_0(%arg0: i32, %arg1: i32) -> (i32, i32, i32, i32) {
    %c0_i32 = arith.constant 0 : i32
    %c0_i32_0 = arith.constant 0 : i32
    %c0_i32_1 = arith.constant 0 : i32
    return %arg0, %arg1, %c0_i32, %c0_i32_0 : i32, i32, i32, i32
  }
  func.func @transform_1(%arg0: i32, %arg1: i32) -> (i32, i32, i32, i32) {
    %c0_i32 = arith.constant 0 : i32
    %c0_i32_0 = arith.constant 0 : i32
    %c0_i32_1 = arith.constant 0 : i32
    %c0_i32_2 = arith.constant 0 : i32
    return %arg1, %c0_i32, %c0_i32_0, %c0_i32_1 : i32, i32, i32, i32
  }
  func.func @transform_2(%arg0: i32, %arg1: i32) -> (i32, i32, i32) {
    %c0_i32 = arith.constant 0 : i32
    %c0_i32_0 = arith.constant 0 : i32
    %c0_i32_1 = arith.constant 0 : i32
    return %arg1, %c0_i32, %c0_i32_0 : i32, i32, i32
  }
  func.func @transform_3(%arg0: i32, %arg1: i32) -> (i32, i32, i32, i32) {
    %c0_i32 = arith.constant 0 : i32
    %c0_i32_0 = arith.constant 0 : i32
    %c0_i32_1 = arith.constant 0 : i32
    return %arg0, %arg1, %c0_i32, %c0_i32_0 : i32, i32, i32, i32
  }
}

</mosaic_0001>

<bundles_post_ra>
// kernel: _conv2d_pallas.1
= control target key start
LH: loop header
LB: loop body
LE: loop exit
PB: predicated region body
PF: predicated region fallthrough
CT: control target
= control target key end

     0   :  { %s1739_s12 = smov 0   ;;  %s1741_s13 = smov 0   ;;  %s1896_s0 = inlined_call_operand.vmem [shape: bf16[2,1,4,512], index: 0, kind: input, shape index: {}]   ;;  %s1897_s1 = inlined_call_operand.vmem [shape: bf16[1,9,8,4], index: 1, kind: input, shape index: {}]   ;;  %s1898_s2 = inlined_call_operand.vmem [shape: f32[1,8,1], index: 2, kind: input, shape index: {}]   ;;  %s1899_s3 = inlined_call_operand.vmem [shape: f32[2,1,8,384], index: 3, kind: output, shape index: {}]  }
   0x1   :  { %s1743_s14 = smov 0  }
   0x2 LB: > { %s25_s15 = sadd.s32 1, %s1701_s13  ;;  %p1529_p0 = scmp.ge.s32.totalorder %s1705_s14, 1  ;;  %s1705_s14 = sphi %s1743_s14, %s13_s14   ;;  %s1701_s13 = sphi %s1741_s13, %s1901_s13   ;;  %s1697_s12 = sphi %s1739_s12, %s1900_s12  }
   0x3   : > { %p27_p1 = scmp.ge.s32.totalorder %s25_s15, 2  ;;  %p176_p2 = scmp.lt.s32.totalorder %s1705_s14, 3 }
   0x5   : > { %s1903_s15 = smov (%p27_p1, %s25_s15), 0  ;;  %p177_p3 = pnand %p1529_p0, %p176_p2 }
   0x6   : > { %p217_p4 = scmp.lt.s32.totalorder (!%p177_p3), %s1697_s12, 1  ;;  %v261_v0 = vlaneseq (!%p177_p3)  ;;  %v1707_v1 = vmov (!%p177_p3), 1983009808   ;;  %v1708_v5 = vmov (!%p177_p3), 0.0   ;;  %v1709_v6 = vmov (!%p177_p3), 0   ;;  %s1711_s20 = smov (!%p177_p3), 127  }
   0x7   : > { %180 = sbr.rel (%p177_p3) target bundleno = 427 (0x1ab), region = 32  ;;  %v259_v2 = vunpack.c.l.s4 (!%p177_p3), %v1707_v1  ;;  %1589 = vmatprep.subr.bf16.mxu1 (!%p177_p3), %v1708_v5  ;;  %332 = vmatprep.mubr.bf16.mxu0 (!%p177_p3), %v1709_v6  ;;  %vm1710_vm0 = vmmov (!%p177_p3), 0   ;;  %s1712_s21 = smov (!%p177_p3), 126   ;;  %v245_v18 = vld [vmem:[%s1898_s2] sm:$0xff] (!%p177_p3)  ;;  %vm282_vm1 = vcmask (!%p177_p3), 1039360   ;;  %vm290_vm2 = vcmask (!%p177_p3), 1041408  }
   0x8   : > { %v262_v3 = vshrl.u32 (!%p177_p3), %v261_v0, 7  ;;  %1680 = vset.pattern.permute.xlu0 (!%p177_p3), %v1709_v6  ;;  %1591 = vmatprep.mubr.msk.bf16.mxu1 (!%p177_p3), %vm1710_vm0, %v1708_v5  ;;  %s1713_s22 = smov (!%p177_p3), 110   ;;  %s1714_s23 = smov (!%p177_p3), 109   ;;  %v1533_v28 = vld [vmem:[%s1897_s1 + $0x4] sm:$0xf] (!%p177_p3)  ;;  %vm286_vm3 = vcmask (!%p177_p3), 31744  }
   0x9   : > { %v260_v4 = vunpack.c.0.s8 (!%p177_p3), %v259_v2  ;;  %s1715_s24 = smov (!%p177_p3), 108   ;;  %s1716_s25 = smov (!%p177_p3), 92   ;;  %vm520_vm4 = vcmask (!%p177_p3), 1031168   ;;  %v252_v39 = vld [vmem:[%s1897_s1] sm:$0xf] (!%p177_p3)  ;;  %vm649_vm5 = vcmask (!%p177_p3), 900096  }
   0xa   : > { %s1717_s26 = smov (!%p177_p3), 91   ;;  %s1718_s27 = smov (!%p177_p3), 90   ;;  %v1540_v49 = vld [vmem:[%s1897_s1 + $0x8] sm:$0xf] (!%p177_p3)  ;;  %vm778_vm6 = vcmask (!%p177_p3), 891904   ;;  %vm907_vm7 = vcmask (!%p177_p3), 883712  }
   0xb   : > { %v263_v7 = vsub.s32 (!%p177_p3), %v260_v4, %v262_v3  ;;  %v1544_v59 = vld [vmem:[%s1897_s1 + $0xc] sm:$0xf] (!%p177_p3)  ;;  %vm1036_vm8 = vcmask (!%p177_p3), 752640   ;;  %vm1165_vm9 = vcmask (!%p177_p3), 744448   ;;  %vm1294_vm10 = vcmask (!%p177_p3), 736256  }
   0xe   : > { %s1905_s12 = smov (!%p217_p4, %s1697_s12), 1 }
   0xf   : > { %s1570_s16 = sshll.u32 %s1905_s12, 3 }
  0x10   : > { %s225_s19 = scalar_lea.vmem %s1896_s0, %s1570_s16 }
  0x11   : > { %v253_v8 = vld [vmem:[%s225_s19] sm:$0xff] }
  0x12   : > { %v251_v9 = vld [vmem:[%s225_s19] sm:$0x3f]  ;;  %v264_v10 = vrot.slane %v253_v8, %v263_v7  ;;  %v257_v11 = vcombine.high %v253_v8, %v253_v8 }
  0x13   : > { %v1768_v12 = vrot.slane %v251_v9, %v263_v7  ;;  %v382_v13 = vcombine.high %v251_v9, %v251_v9 }
  0x14   : > { %274 = vrot.lane.b32.xlu0 %v264_v10, %s1711_s20  ;;  %v272_v14 = vcombine.high %v264_v10, %v264_v10  ;;  %v271_v15 = vrot.slane %v257_v11, %v263_v7 }
  0x15   : > { %v1770_v16 = vrot.slane %v382_v13, %v263_v7  ;;  %v397_v22 = vcombine.high %v1768_v12, %v1768_v12  ;;  %v402_v31 = vsel %vm290_vm2, %v1768_v12, 0  ;;  %v1548_v7 = vld [vmem:[%s1897_s1 + $0x10] sm:$0xf] }
  0x16   : > { %278 = vrot.lane.b32.xlu1 %v271_v15, %s1711_s20  ;;  %v273_v17 = vcombine.high %v271_v15, %v271_v15 }
  0x17   : > { %v408_v33 = vsel %vm290_vm2, %v1770_v16, 0 }
  0x18   : > { %276 = vrot.lane.b32.xlu0 %v272_v14, %s1711_s20 }
  0x1a   : > { %280 = vrot.lane.b32.xlu1 %v273_v17, %s1711_s20 }
  0x1c   : > { %512 = vrot.lane.b32.xlu0 %v264_v10, %s1712_s21 }
  0x1e   : > { %514 = vrot.lane.b32.xlu1 %v272_v14, %s1712_s21 }
  0x20   : > { %516 = vrot.lane.b32.xlu0 %v271_v15, %s1712_s21 }
  0x22   : > { %518 = vrot.lane.b32.xlu1 %v273_v17, %s1712_s21 }
  0x24   : > { %641 = vrot.lane.b32.xlu0 %v264_v10, %s1713_s22 }
  0x26   : > { %643 = vrot.lane.b32.xlu1 %v272_v14, %s1713_s22 }
  0x28   : > { %645 = vrot.lane.b32.xlu0 %v271_v15, %s1713_s22 }
  0x2a   : > { %647 = vrot.lane.b32.xlu1 %v273_v17, %s1713_s22 }
  0x2c   : > { %770 = vrot.lane.b32.xlu0 %v264_v10, %s1714_s23 }
  0x2e   : > { %772 = vrot.lane.b32.xlu1 %v272_v14, %s1714_s23 }
  0x30   : > { %774 = vrot.lane.b32.xlu0 %v271_v15, %s1714_s23 }
  0x32   : > { %776 = vrot.lane.b32.xlu1 %v273_v17, %s1714_s23 }
  0x34   : > { %899 = vrot.lane.b32.xlu0 %v264_v10, %s1715_s24 }
  0x36   : > { %901 = vrot.lane.b32.xlu1 %v272_v14, %s1715_s24 }
  0x38   : > { %903 = vrot.lane.b32.xlu0 %v271_v15, %s1715_s24 }
  0x3a   : > { %905 = vrot.lane.b32.xlu1 %v273_v17, %s1715_s24 }
  0x3c   : > { %1028 = vrot.lane.b32.xlu0 %v264_v10, %s1716_s25 }
  0x3e   : > { %1030 = vrot.lane.b32.xlu1 %v272_v14, %s1716_s25 }
  0x40   : > { %1032 = vrot.lane.b32.xlu0 %v271_v15, %s1716_s25 }
  0x42   : > { %1034 = vrot.lane.b32.xlu1 %v273_v17, %s1716_s25  ;;  %s1643_s25 = smul.u32 24, %s1905_s12 }
  0x44   : > { %1157 = vrot.lane.b32.xlu0 %v264_v10, %s1717_s26  ;;  %s243_s28 = scalar_lea.vmem %s1899_s3, %s1643_s25 }
  0x46   : > { %1159 = vrot.lane.b32.xlu1 %v272_v14, %s1717_s26 }
  0x48   : > { %1161 = vrot.lane.b32.xlu0 %v271_v15, %s1717_s26 }
  0x4a   : > { %1163 = vrot.lane.b32.xlu1 %v273_v17, %s1717_s26 }
  0x4c   : > { %1286 = vrot.lane.b32.xlu0 %v264_v10, %s1718_s27 }
  0x4e   : > { %1288 = vrot.lane.b32.xlu1 %v272_v14, %s1718_s27 }
  0x50   : > { %1290 = vrot.lane.b32.xlu0 %v271_v15, %s1718_s27 }
  0x52   : > { %1292 = vrot.lane.b32.xlu1 %v273_v17, %s1718_s27  ;;  %v1552_v17 = vld [vmem:[%s1897_s1 + $0x14] sm:$0xf] }
  0x54   : > { %248 = vperm.xlu0 %1680, %v245_v18  }
  0x86   : > { %v275_v19 = vpop.permute.xlu0 %274 }
  0x88   : > { %v279_v20 = vpop.permute.xlu1 %278 }
  0x8a   : > { %v277_v21 = vpop.permute.xlu0 %276 }
  0x8b   : > { %v284_v23 = vsel %vm282_vm1, %v277_v21, %v279_v20  ;;  %v283_v24 = vsel %vm282_vm1, %v275_v19, %v277_v21 }
  0x8c   : > { %1534 = vmatprep.subr.msk.bf16.mxu0 %vm290_vm2, %v284_v23  ;;  %v281_v25 = vpop.permute.xlu1 %280  ;;  %v292_v26 = vsel %vm290_vm2, %v283_v24, 0 }
  0x8d   : > { %301 = vmatpush1.bf16.msra.mxu0 %v292_v26  ;;  %v285_v27 = vsel %vm282_vm1, %v279_v20, %v281_v25 }
  0x8e   : > { %v298_v29 = vsel %vm290_vm2, %v285_v27, 0  ;;  %v513_v30 = vpop.permute.xlu0 %512  ;;  %1537 = vmatprep.subr.msk.bf16.mxu0 %vm290_vm2, %v397_v22  ;;  %v1556_v27 = vld [vmem:[%s1897_s1 + $0x18] sm:$0xf] }
  0x8f   : > { %1590 = vmatpush3.bf16.msra.mxu1 %v298_v29 }
  0x90   : > { %1535 = vmatmul.mubr.msk.bf16.vlgmr.msra.gmra.mrb[0].mxu0 %vm286_vm3, %v1533_v28  ;;  %1595 = vmatprep.subr.bf16.mxu1 %v1708_v5  ;;  %v515_v32 = vpop.permute.xlu1 %514 }
  0x91   : > { %411 = vmatpush1.bf16.msra.mxu0 %v402_v31  ;;  %442 = vmatprep.mubr.bf16.mxu0 %v1709_v6  ;;  %v521_v35 = vsel %vm520_vm4, %v513_v30, %v515_v32 }
  0x92   : > { %1592 = vmatmul.mubr.msk.bf16.vlgmr.msra.gmra.mrb[0].mxu1 %vm286_vm3, %v1533_v28  ;;  %v517_v34 = vpop.permute.xlu0 %516  ;;  %v528_v40 = vsel %vm290_vm2, %v521_v35, 0 }
  0x93   : > { %1596 = vmatpush3.bf16.msra.mxu1 %v408_v33  ;;  %v522_v36 = vsel %vm520_vm4, %v515_v32, %v517_v34  ;;  %1597 = vmatprep.mubr.msk.bf16.mxu1 %vm1710_vm0, %v1708_v5 }
  0x94   : > { %1541 = vmatprep.subr.msk.bf16.mxu0 %vm290_vm2, %v522_v36  ;;  %v519_v37 = vpop.permute.xlu1 %518  ;;  %1601 = vmatprep.subr.bf16.mxu1 %v1708_v5 }
  0x95   : > { %v523_v38 = vsel %vm520_vm4, %v517_v34, %v519_v37  ;;  %v1560_v37 = vld [vmem:[%s1897_s1 + $0x1c] sm:$0xf] }
  0x96   : > { %v642_v41 = vpop.permute.xlu0 %641  ;;  %v534_v42 = vsel %vm290_vm2, %v523_v38, 0 }
  0x98   : > { %1538 = vmatmul.mubr.msk.bf16.vlgmr.msra.gmra.mrb[4].mxu0 %vm286_vm3, %v252_v39  ;;  %v644_v43 = vpop.permute.xlu1 %643 }
  0x99   : > { %537 = vmatpush1.bf16.msra.mxu0 %v528_v40  ;;  %568 = vmatprep.mubr.bf16.mxu0 %v1709_v6  ;;  %v650_v45 = vsel %vm649_vm5, %v642_v41, %v644_v43  ;;  %v1564_v40 = vld [vmem:[%s1897_s1 + $0x20] sm:$0xf] }
  0x9a   : > { %1598 = vmatmul.mubr.msk.bf16.vlgmr.msra.gmra.mrb[4].mxu1 %vm286_vm3, %v252_v39  ;;  %v646_v44 = vpop.permute.xlu0 %645  ;;  %v657_v50 = vsel %vm290_vm2, %v650_v45, 0 }
  0x9b   : > { %1602 = vmatpush3.bf16.msra.mxu1 %v534_v42  ;;  %v651_v46 = vsel %vm649_vm5, %v644_v43, %v646_v44  ;;  %1603 = vmatprep.mubr.msk.bf16.mxu1 %vm1710_vm0, %v1708_v5 }
  0x9c   : > { %1545 = vmatprep.subr.msk.bf16.mxu0 %vm290_vm2, %v651_v46  ;;  %v648_v47 = vpop.permute.xlu1 %647  ;;  %1607 = vmatprep.subr.bf16.mxu1 %v1708_v5 }
  0x9d   : > { %v652_v48 = vsel %vm649_vm5, %v646_v44, %v648_v47 }
  0x9e   : > { %v771_v51 = vpop.permute.xlu0 %770  ;;  %v663_v52 = vsel %vm290_vm2, %v652_v48, 0 }
  0xa0   : > { %1542 = vmatmul.mubr.msk.bf16.vlgmr.msra.gmra.mrb[8].mxu0 %vm286_vm3, %v1540_v49  ;;  %v773_v53 = vpop.permute.xlu1 %772 }
  0xa1   : > { %666 = vmatpush1.bf16.msra.mxu0 %v657_v50  ;;  %697 = vmatprep.mubr.bf16.mxu0 %v1709_v6  ;;  %v779_v55 = vsel %vm778_vm6, %v771_v51, %v773_v53 }
  0xa2   : > { %1604 = vmatmul.mubr.msk.bf16.vlgmr.msra.gmra.mrb[8].mxu1 %vm286_vm3, %v1540_v49  ;;  %v775_v54 = vpop.permute.xlu0 %774  ;;  %v786_v60 = vsel %vm290_vm2, %v779_v55, 0 }
  0xa3   : > { %1608 = vmatpush3.bf16.msra.mxu1 %v663_v52  ;;  %v780_v56 = vsel %vm778_vm6, %v773_v53, %v775_v54  ;;  %1609 = vmatprep.mubr.msk.bf16.mxu1 %vm1710_vm0, %v1708_v5 }
  0xa4   : > { %1549 = vmatprep.subr.msk.bf16.mxu0 %vm290_vm2, %v780_v56  ;;  %v777_v57 = vpop.permute.xlu1 %776  ;;  %1613 = vmatprep.subr.bf16.mxu1 %v1708_v5 }
  0xa5   : > { %v781_v58 = vsel %vm778_vm6, %v775_v54, %v777_v57 }
  0xa6   : > { %v900_v61 = vpop.permute.xlu0 %899  ;;  %v792_v62 = vsel %vm290_vm2, %v781_v58, 0 }
  0xa8   : > { %1546 = vmatmul.mubr.msk.bf16.vlgmr.msra.gmra.mrb[12].mxu0 %vm286_vm3, %v1544_v59  ;;  %v902_v63 = vpop.permute.xlu1 %901 }
  0xa9   : > { %795 = vmatpush1.bf16.msra.mxu0 %v786_v60  ;;  %826 = vmatprep.mubr.bf16.mxu0 %v1709_v6  ;;  %v908_v1 = vsel %vm907_vm7, %v900_v61, %v902_v63 }
  0xaa   : > { %1610 = vmatmul.mubr.msk.bf16.vlgmr.msra.gmra.mrb[12].mxu1 %vm286_vm3, %v1544_v59  ;;  %v904_v0 = vpop.permute.xlu0 %903  ;;  %v915_v8 = vsel %vm290_vm2, %v908_v1, 0 }
  0xab   : > { %1614 = vmatpush3.bf16.msra.mxu1 %v792_v62  ;;  %v909_v2 = vsel %vm907_vm7, %v902_v63, %v904_v0  ;;  %1615 = vmatprep.mubr.msk.bf16.mxu1 %vm1710_vm0, %v1708_v5 }
  0xac   : > { %1553 = vmatprep.subr.msk.bf16.mxu0 %vm290_vm2, %v909_v2  ;;  %v906_v3 = vpop.permute.xlu1 %905  ;;  %1619 = vmatprep.subr.bf16.mxu1 %v1708_v5 }
  0xad   : > { %v910_v4 = vsel %vm907_vm7, %v904_v0, %v906_v3 }
  0xae   : > { %v1029_v9 = vpop.permute.xlu0 %1028  ;;  %v921_v10 = vsel %vm290_vm2, %v910_v4, 0 }
  0xb0   : > { %1550 = vmatmul.mubr.msk.bf16.vlgmr.msra.gmra.mrb[16].mxu0 %vm286_vm3, %v1548_v7  ;;  %v1031_v11 = vpop.permute.xlu1 %1030 }
  0xb1   : > { %924 = vmatpush1.bf16.msra.mxu0 %v915_v8  ;;  %955 = vmatprep.mubr.bf16.mxu0 %v1709_v6  ;;  %v1037_v13 = vsel %vm1036_vm8, %v1029_v9, %v1031_v11 }
  0xb2   : > { %1616 = vmatmul.mubr.msk.bf16.vlgmr.msra.gmra.mrb[16].mxu1 %vm286_vm3, %v1548_v7  ;;  %v1033_v12 = vpop.permute.xlu0 %1032  ;;  %v1044_v18 = vsel %vm290_vm2, %v1037_v13, 0 }
  0xb3   : > { %1620 = vmatpush3.bf16.msra.mxu1 %v921_v10  ;;  %v1038_v14 = vsel %vm1036_vm8, %v1031_v11, %v1033_v12  ;;  %1621 = vmatprep.mubr.msk.bf16.mxu1 %vm1710_vm0, %v1708_v5 }
  0xb4   : > { %1557 = vmatprep.subr.msk.bf16.mxu0 %vm290_vm2, %v1038_v14  ;;  %v1035_v15 = vpop.permute.xlu1 %1034  ;;  %1625 = vmatprep.subr.bf16.mxu1 %v1708_v5 }
  0xb5   : > { %v1039_v16 = vsel %vm1036_vm8, %v1033_v12, %v1035_v15 }
  0xb6   : > { %v1158_v19 = vpop.permute.xlu0 %1157  ;;  %v1050_v20 = vsel %vm290_vm2, %v1039_v16, 0 }
  0xb8   : > { %1554 = vmatmul.mubr.msk.bf16.vlgmr.msra.gmra.mrb[20].mxu0 %vm286_vm3, %v1552_v17  ;;  %v1160_v21 = vpop.permute.xlu1 %1159 }
  0xb9   : > { %1053 = vmatpush1.bf16.msra.mxu0 %v1044_v18  ;;  %1084 = vmatprep.mubr.bf16.mxu0 %v1709_v6  ;;  %v1166_v23 = vsel %vm1165_vm9, %v1158_v19, %v1160_v21 }
  0xba   : > { %1622 = vmatmul.mubr.msk.bf16.vlgmr.msra.gmra.mrb[20].mxu1 %vm286_vm3, %v1552_v17  ;;  %v1162_v22 = vpop.permute.xlu0 %1161  ;;  %v1173_v28 = vsel %vm290_vm2, %v1166_v23, 0 }
  0xbb   : > { %1626 = vmatpush3.bf16.msra.mxu1 %v1050_v20  ;;  %v1167_v24 = vsel %vm1165_vm9, %v1160_v21, %v1162_v22  ;;  %1627 = vmatprep.mubr.msk.bf16.mxu1 %vm1710_vm0, %v1708_v5 }
  0xbc   : > { %1561 = vmatprep.subr.msk.bf16.mxu0 %vm290_vm2, %v1167_v24  ;;  %v1164_v25 = vpop.permute.xlu1 %1163  ;;  %1631 = vmatprep.subr.bf16.mxu1 %v1708_v5 }
  0xbd   : > { %v1168_v26 = vsel %vm1165_vm9, %v1162_v22, %v1164_v25 }
  0xbe   : > { %v1287_v29 = vpop.permute.xlu0 %1286  ;;  %v1179_v30 = vsel %vm290_vm2, %v1168_v26, 0 }
  0xc0   : > { %1558 = vmatmul.mubr.msk.bf16.vlgmr.msra.gmra.mrb[24].mxu0 %vm286_vm3, %v1556_v27  ;;  %v1289_v31 = vpop.permute.xlu1 %1288 }
  0xc1   : > { %1182 = vmatpush1.bf16.msra.mxu0 %v1173_v28  ;;  %1213 = vmatprep.mubr.bf16.mxu0 %v1709_v6  ;;  %v1295_v33 = vsel %vm1294_vm10, %v1287_v29, %v1289_v31 }
  0xc2   : > { %1628 = vmatmul.mubr.msk.bf16.vlgmr.msra.gmra.mrb[24].mxu1 %vm286_vm3, %v1556_v27  ;;  %v1291_v32 = vpop.permute.xlu0 %1290  ;;  %v1302_v38 = vsel %vm290_vm2, %v1295_v33, 0 }
  0xc3   : > { %1632 = vmatpush3.bf16.msra.mxu1 %v1179_v30  ;;  %v1296_v34 = vsel %vm1294_vm10, %v1289_v31, %v1291_v32  ;;  %1633 = vmatprep.mubr.msk.bf16.mxu1 %vm1710_vm0, %v1708_v5 }
  0xc4   : > { %1565 = vmatprep.subr.msk.bf16.mxu0 %vm290_vm2, %v1296_v34  ;;  %v1293_v35 = vpop.permute.xlu1 %1292  ;;  %1637 = vmatprep.subr.bf16.mxu1 %v1708_v5 }
  0xc5   : > { %v1297_v36 = vsel %vm1294_vm10, %v1291_v32, %v1293_v35 }
  0xc6   : > { %v1308_v39 = vsel %vm290_vm2, %v1297_v36, 0 }
  0xc8   : > { %1562 = vmatmul.mubr.msk.bf16.vlgmr.msra.gmra.mrb[28].mxu0 %vm286_vm3, %v1560_v37 }
  0xc9   : > { %1311 = vmatpush1.bf16.msra.mxu0 %v1302_v38  ;;  %1342 = vmatprep.mubr.bf16.mxu0 %v1709_v6 }
  0xca   : > { %1634 = vmatmul.mubr.msk.bf16.vlgmr.msra.gmra.mrb[28].mxu1 %vm286_vm3, %v1560_v37 }
  0xcb   : > { %1638 = vmatpush3.bf16.msra.mxu1 %v1308_v39  ;;  %1639 = vmatprep.mubr.msk.bf16.mxu1 %vm1710_vm0, %v1708_v5 }
  0xd0   : > { %1566 = vmatmul.mubr.msk.bf16.vlgmr.msra.gmra.mrb[32].mxu0 %vm286_vm3, %v1564_v40 }
  0xd2   : > { %1640 = vmatmul.mubr.msk.bf16.vlgmr.msra.gmra.mrb[32].mxu1 %vm286_vm3, %v1564_v40 }
 0x163   : > { %v334_v41 = vpop.f32.mrb[0].mxu0 }
 0x164   : > { %v336_v42 = vpop.f32.mrb[1].mxu0 }
 0x165   : > { %v338_v43 = vpop.f32.mrb[2].mxu0  ;;  %v375_v44 = vpop.f32.mrb[0].mxu1 }
 0x166   : > { %v339_v45 = vpop.f32.mrb[3].mxu0  ;;  %v1593_v6 = vpop.f32.mrb[1].mxu1 }
 0x167   : > { %v378_v46 = vpop.f32.mrb[2].mxu1 }
 0x168   : > { %v1594_v47 = vpop.f32.mrb[3].mxu1 }
 0x16b   : > { %v444_v48 = vpop.f32.mrb[4].mxu0 }
 0x16c   : > { %v445_v49 = vadd.f32 %v444_v48, %v334_v41  ;;  %v446_v50 = vpop.f32.mrb[5].mxu0 }
 0x16d   : > { %v447_v5 = vadd.f32 %v446_v50, %v336_v42  ;;  %v448_v51 = vpop.f32.mrb[6].mxu0  ;;  %v485_v52 = vpop.f32.mrb[4].mxu1 }
 0x16e   : > { %v486_v53 = vadd.f32 %v485_v52, %v375_v44  ;;  %v449_v54 = vpop.f32.mrb[7].mxu0  ;;  %v1599_v55 = vpop.f32.mrb[5].mxu1 }
 0x16f   : > { %v488_v56 = vpop.f32.mrb[6].mxu1 }
 0x170   : > { %v1600_v57 = vpop.f32.mrb[7].mxu1 }
 0x173   : > { %v570_v58 = vpop.f32.mrb[8].mxu0 }
 0x174   : > { %v617_v59 = vadd.f32 %v570_v58, %v445_v49  ;;  %v572_v60 = vpop.f32.mrb[9].mxu0 }
 0x175   : > { %v618_v61 = vadd.f32 %v572_v60, %v447_v5  ;;  %v574_v62 = vpop.f32.mrb[10].mxu0  ;;  %v611_v63 = vpop.f32.mrb[8].mxu1 }
 0x176   : > { %v619_v0 = vadd.f32 %v611_v63, %v486_v53  ;;  %v575_v1 = vpop.f32.mrb[11].mxu0  ;;  %v1605_v2 = vpop.f32.mrb[9].mxu1 }
 0x177   : > { %v614_v3 = vpop.f32.mrb[10].mxu1 }
 0x178   : > { %v1606_v4 = vpop.f32.mrb[11].mxu1 }
 0x17b   : > { %v699_v7 = vpop.f32.mrb[12].mxu0 }
 0x17c   : > { %v746_v8 = vadd.f32 %v699_v7, %v617_v59  ;;  %v701_v9 = vpop.f32.mrb[13].mxu0 }
 0x17d   : > { %v747_v10 = vadd.f32 %v701_v9, %v618_v61  ;;  %v703_v11 = vpop.f32.mrb[14].mxu0  ;;  %v740_v12 = vpop.f32.mrb[12].mxu1 }
 0x17e   : > { %v748_v13 = vadd.f32 %v740_v12, %v619_v0  ;;  %v704_v14 = vpop.f32.mrb[15].mxu0  ;;  %v1611_v15 = vpop.f32.mrb[13].mxu1 }
 0x17f   : > { %v743_v16 = vpop.f32.mrb[14].mxu1  ;;  %v249_v61 = vpop.permute.xlu0 %248 }
 0x180   : > { %v1612_v17 = vpop.f32.mrb[15].mxu1 }
 0x183   : > { %v828_v18 = vpop.f32.mrb[16].mxu0 }
 0x184   : > { %v875_v19 = vadd.f32 %v828_v18, %v746_v8  ;;  %v830_v20 = vpop.f32.mrb[17].mxu0 }
 0x185   : > { %v876_v21 = vadd.f32 %v830_v20, %v747_v10  ;;  %v832_v22 = vpop.f32.mrb[18].mxu0  ;;  %v869_v23 = vpop.f32.mrb[16].mxu1 }
 0x186   : > { %v877_v24 = vadd.f32 %v869_v23, %v748_v13  ;;  %v833_v25 = vpop.f32.mrb[19].mxu0  ;;  %v1617_v26 = vpop.f32.mrb[17].mxu1 }
 0x187   : > { %v872_v27 = vpop.f32.mrb[18].mxu1 }
 0x188   : > { %v1618_v28 = vpop.f32.mrb[19].mxu1 }
 0x18b   : > { %v957_v29 = vpop.f32.mrb[20].mxu0 }
 0x18c   : > { %v1004_v30 = vadd.f32 %v957_v29, %v875_v19  ;;  %v959_v31 = vpop.f32.mrb[21].mxu0 }
 0x18d   : > { %v1005_v32 = vadd.f32 %v959_v31, %v876_v21  ;;  %v961_v33 = vpop.f32.mrb[22].mxu0  ;;  %v998_v34 = vpop.f32.mrb[20].mxu1 }
 0x18e   : > { %v1006_v35 = vadd.f32 %v998_v34, %v877_v24  ;;  %v962_v36 = vpop.f32.mrb[23].mxu0  ;;  %v1623_v37 = vpop.f32.mrb[21].mxu1 }
 0x18f   : > { %v1001_v38 = vpop.f32.mrb[22].mxu1 }
 0x190   : > { %v1624_v39 = vpop.f32.mrb[23].mxu1 }
 0x193   : > { %v1086_v40 = vpop.f32.mrb[24].mxu0 }
 0x194   : > { %v1133_v41 = vadd.f32 %v1086_v40, %v1004_v30  ;;  %v1088_v42 = vpop.f32.mrb[25].mxu0 }
 0x195   : > { %v1134_v43 = vadd.f32 %v1088_v42, %v1005_v32  ;;  %v1090_v44 = vpop.f32.mrb[26].mxu0  ;;  %v1127_v45 = vpop.f32.mrb[24].mxu1 }
 0x196   : > { %v1135_v6 = vadd.f32 %v1127_v45, %v1006_v35  ;;  %v1091_v46 = vpop.f32.mrb[27].mxu0  ;;  %v1629_v47 = vpop.f32.mrb[25].mxu1 }
 0x197   : > { %v1130_v48 = vpop.f32.mrb[26].mxu1 }
 0x198   : > { %v1630_v49 = vpop.f32.mrb[27].mxu1 }
 0x19b   : > { %v1215_v50 = vpop.f32.mrb[28].mxu0 }
 0x19c   : > { %v1262_v5 = vadd.f32 %v1215_v50, %v1133_v41  ;;  %v1217_v51 = vpop.f32.mrb[29].mxu0 }
 0x19d   : > { %v1263_v52 = vadd.f32 %v1217_v51, %v1134_v43  ;;  %v1219_v53 = vpop.f32.mrb[30].mxu0  ;;  %v1256_v54 = vpop.f32.mrb[28].mxu1 }
 0x19e   : > { %v1264_v55 = vadd.f32 %v1256_v54, %v1135_v6  ;;  %v1220_v56 = vpop.f32.mrb[31].mxu0  ;;  %v1635_v57 = vpop.f32.mrb[29].mxu1 }
 0x19f   : > { %v1259_v58 = vpop.f32.mrb[30].mxu1 }
 0x1a0   : > { %v1636_v59 = vpop.f32.mrb[31].mxu1 }
 0x1a3   : > { %v1344_v60 = vpop.f32.mrb[32].mxu0 }
 0x1a4   : > { %v1391_v62 = vadd.f32 %v1344_v60, %v1262_v5  ;;  %v1346_v63 = vpop.f32.mrb[33].mxu0 }
 0x1a5   : > { %v1392_v0 = vadd.f32 %v1346_v63, %v1263_v52  ;;  %v1348_v1 = vpop.f32.mrb[34].mxu0  ;;  %v1385_v2 = vpop.f32.mrb[32].mxu1 }
 0x1a6   : > { %v1394_v3 = vadd.f32 %v1391_v62, %v249_v61  ;;  %v1393_v4 = vadd.f32 %v1385_v2, %v1264_v55  ;;  %v1349_v7 = vpop.f32.mrb[35].mxu0  ;;  %v1641_v8 = vpop.f32.mrb[33].mxu1 }
 0x1a7   : > { %v1395_v9 = vadd.f32 %v1392_v0, %v249_v61  ;;  %v1388_v10 = vpop.f32.mrb[34].mxu1 }
 0x1a8   : > { %1397 = vst [vmem:[%s243_s28] sm:$0xff] %v1394_v3  ;;  %v1396_v11 = vadd.f32 %v1393_v4, %v249_v61  ;;  %v1642_v12 = vpop.f32.mrb[35].mxu1 }
 0x1a9   : > { %1398 = vst [vmem:[%s243_s28 + $0x8] sm:$0xff] %v1395_v9 }
 0x1aa   : > { %1399 = vst [vmem:[%s243_s28 + $0x10] sm:$0xff] %v1396_v11 }
 0x1ab PF: > { %s13_s14 = sadd.s32 1, %s1705_s14   ;;  %s1900_s12 = smov %s1701_s13 }
 0x1ac   : > { %p10_p5 = scmp.ge.s32.totalorder %s13_s14, 4   ;;  %s1901_s13 = smov %s1903_s15 }
 0x1ae   :  { %12 = sbr.rel (!%p10_p5) target bundleno = 2 (0x2), region = 76 }

</bundles_post_ra>
